<compile_context>
chip_gen: v7x
topology: tpu7x:2x2x1
jax: 0.10.0
libtpu: 0.0.40
codegen_flags: <defaults>
</compile_context>

<pallas_src>
import jax
import jax.numpy as jnp
from jax import lax
from jax.experimental import pallas as pl
from jax.experimental.pallas import tpu as pltpu


def _round_up(a, b):
    return (a + b - 1) // b * b


def _pick_tile(n_padded, candidates):
    for c in candidates:
        if n_padded % c == 0:
            return c
    return n_padded


def gcn_kernel(adj_ref, x_ref, w_ref, d_row_ref, d_col_ref, b_ref, o_ref, acc_ref):
    k = pl.program_id(1)

    @pl.when(k == 0)
    def _():
        acc_ref[...] = jnp.zeros_like(acc_ref)

    # Linear transform of this source-node (column) block; the source-side D^-1/2 is
    # folded into the rows of xw instead of scaling the N x N adjacency.
    xw = jnp.dot(x_ref[...], w_ref[...], preferred_element_type=jnp.float32)   # (tk, Fp)
    xw = d_col_ref[...] * xw                                                   # (tk, Fp)

    # Adjacency tile is bf16 storage (values exactly 0/1); cast keeps math in f32.
    adj = adj_ref[...].astype(jnp.float32)                                     # (tm, tk)
    acc_ref[...] += jnp.dot(adj, xw, preferred_element_type=jnp.float32)

    @pl.when(k == pl.num_programs(1) - 1)
    def _():
        out = d_row_ref[...] * acc_ref[...] + b_ref[...]                       # target-side D^-1/2, bias
        o_ref[...] = jnp.maximum(out, 0.0).astype(o_ref.dtype)                 # ReLU


def gcn_layer(x, edge_index, w, b):
    """GCNLayer forward: relu(GCNConv(x, edge_index))."""
    n, f_in = x.shape
    f_out = w.shape[1]

    # ---- TPU-friendly padded shapes ----
    np_ = _round_up(n, 128)              # adjacency padded square (tileable in 128s)
    fp = _round_up(f_out, 128)           # lane-dense output / MXU-wide columns
    tm = _pick_tile(np_, (256, 128))                 # row tile (parallel axis)
    tk = _pick_tile(np_, (1024, 512, 256, 128))      # reduction tile over source nodes

    src = edge_index[0].astype(jnp.int32)
    dst = edge_index[1].astype(jnp.int32)
    loops = jnp.arange(n, dtype=jnp.int32)

    # Dense adjacency (A[target, source] = 1) with self-loops fused into one scatter.
    # Stored as bf16: 0/1 is exact and it halves the dominant operand's footprint.
    adj = jnp.zeros((np_, np_), jnp.bfloat16).at[
        jnp.concatenate([dst, loops]), jnp.concatenate([src, loops])
    ].set(jnp.bfloat16(1.0))

    # Symmetric normalization factors; padded rows have degree 0 -> factor 0.
    deg = jnp.sum(adj, axis=1, keepdims=True, dtype=jnp.float32)               # (Np, 1)
    d_inv_sqrt = jnp.where(deg > 0, lax.rsqrt(deg), 0.0).astype(jnp.float32)   # (Np, 1)

    x_p = jnp.pad(x.astype(jnp.float32), ((0, np_ - n), (0, 0)))               # (Np, F_in)
    w_p = jnp.pad(w.astype(jnp.float32), ((0, 0), (0, fp - f_out)))            # (F_in, Fp)
    b_p = jnp.pad(b.astype(jnp.float32).reshape(1, f_out),
                  ((0, 0), (0, fp - f_out)))                                   # (1, Fp)

    grid = (np_ // tm, np_ // tk)

    out = pl.pallas_call(
        gcn_kernel,
        out_shape=jax.ShapeDtypeStruct((np_, fp), jnp.float32),
        grid_spec=pltpu.PrefetchScalarGridSpec(
            num_scalar_prefetch=0,
            grid=grid,
            in_specs=[
                pl.BlockSpec((tm, tk), lambda i, k: (i, k)),       # adjacency tile
                pl.BlockSpec((tk, f_in), lambda i, k: (k, 0)),     # x rows of source block
                pl.BlockSpec((f_in, fp), lambda i, k: (0, 0)),     # W (full, padded)
                pl.BlockSpec((tm, 1), lambda i, k: (i, 0)),        # D^-1/2 (target rows)
                pl.BlockSpec((tk, 1), lambda i, k: (k, 0)),        # D^-1/2 (source rows)
                pl.BlockSpec((1, fp), lambda i, k: (0, 0)),        # bias (padded)
            ],
            out_specs=pl.BlockSpec((tm, fp), lambda i, k: (i, 0)),
            scratch_shapes=[pltpu.VMEM((tm, fp), jnp.float32)],
        ),
        compiler_params=pltpu.CompilerParams(
            dimension_semantics=("parallel", "arbitrary"),
        ),
    )(adj, x_p, w_p, d_inv_sqrt, d_inv_sqrt, b_p)

    return out[:n, :f_out]


def gcn_reference(x, edge_index, w, b):
    n = x.shape[0]
    src, dst = edge_index[0], edge_index[1]
    adj = jnp.zeros((n, n), jnp.float32).at[dst, src].set(1.0)
    adj = jnp.maximum(adj, jnp.eye(n, dtype=jnp.float32))
    deg = adj.sum(axis=1, keepdims=True)
    d = jnp.where(deg > 0, 1.0 / jnp.sqrt(deg), 0.0)
    a_hat = adj * d * d.T
    return jnp.maximum(a_hat @ (x @ w) + b, 0.0)


if __name__ == "__main__":
    N, E, F_IN, F_OUT = 64, 256, 16, 32

    key = jax.random.PRNGKey(0)
    kx, ke1, ke2, kw, kb = jax.random.split(key, 5)

    x = jax.random.normal(kx, (N, F_IN), dtype=jnp.float32)
    src = jax.random.randint(ke1, (E,), 0, N, dtype=jnp.int32)
    dst = jax.random.randint(ke2, (E,), 0, N, dtype=jnp.int32)
    edge_index = jnp.stack([src, dst], axis=0)                 # (2, E)

    # Deterministic parameter init (glorot-ish), matching GCNConv(in=16, out=32, bias=True).
    scale = (6.0 / (F_IN + F_OUT)) ** 0.5
    w = jax.random.uniform(kw, (F_IN, F_OUT), jnp.float32, -scale, scale)
    b = jnp.zeros((1, F_OUT), jnp.float32)

    out = gcn_layer(x, edge_index, w, b)
    out = jax.block_until_ready(out)

    ref = gcn_reference(x, edge_index, w, b)
    assert out.shape == (N, F_OUT)
    assert jnp.allclose(out, ref, atol=1e-4, rtol=1e-4), "mismatch vs reference"

    print("KERNEL_OK")
</pallas_src>

<mosaic_0001>
module attributes {stable_mosaic.version = 11 : i64} {
  func.func @gcn_kernel(%arg0: i32, %arg1: i32, %arg2: memref<128x128xbf16, #tpu.memory_space<vmem>>, %arg3: memref<128x16xf32, #tpu.memory_space<vmem>>, %arg4: memref<16x128xf32, #tpu.memory_space<vmem>>, %arg5: memref<128x1xf32, #tpu.memory_space<vmem>>, %arg6: memref<128x1xf32, #tpu.memory_space<vmem>>, %arg7: memref<1x128xf32, #tpu.memory_space<vmem>>, %arg8: memref<128x128xf32, #tpu.memory_space<vmem>>, %arg9: memref<128x128xf32, #tpu.memory_space<vmem>>) attributes {dimension_semantics = [#tpu.dimension_semantics<parallel>, #tpu.dimension_semantics<arbitrary>], iteration_bounds = array<i64: 1, 1>, scalar_prefetch = 0 : i64, scratch_operands = 1 : i64, tpu.core_type = #tpu.core_type<tc>, window_params = [{transform_indices = @transform_0, window_bounds = array<i64: 128, 128>}, {transform_indices = @transform_1, window_bounds = array<i64: 128, 16>}, {pipeline_mode = #tpu.pipeline_mode<synchronous>, transform_indices = @transform_2, window_bounds = array<i64: 16, 128>}, {transform_indices = @transform_3, window_bounds = array<i64: 128, 1>}, {transform_indices = @transform_4, window_bounds = array<i64: 128, 1>}, {pipeline_mode = #tpu.pipeline_mode<synchronous>, transform_indices = @transform_5, window_bounds = array<i64: 1, 128>}, {transform_indices = @transform_6, window_bounds = array<i64: 128, 128>}]} {
    %c0_i32 = arith.constant 0 : i32
    %0 = arith.cmpi eq, %arg1, %c0_i32 : i32
    %1 = arith.extui %0 : i1 to i32
    %c0_i32_0 = arith.constant 0 : i32
    %2 = arith.cmpi ne, %1, %c0_i32_0 : i32
    scf.if %2 {
      %cst_15 = arith.constant 0.000000e+00 : f32
      %18 = vector.broadcast %cst_15 : f32 to vector<128x128xf32>
      %c0_16 = arith.constant 0 : index
      %c0_17 = arith.constant 0 : index
      %19 = vector.load %arg9[%c0_16, %c0_17] : memref<128x128xf32, #tpu.memory_space<vmem>>, vector<128x128xf32>
      tpu.vector_store %arg9[%c0_16, %c0_17], %18 {strides = array<i32>} : memref<128x128xf32, #tpu.memory_space<vmem>>, vector<128x128xf32>,
    } else {
    }
    %c0 = arith.constant 0 : index
    %c0_1 = arith.constant 0 : index
    %3 = vector.load %arg3[%c0, %c0_1] : memref<128x16xf32, #tpu.memory_space<vmem>>, vector<128x16xf32>
    %c0_2 = arith.constant 0 : index
    %c0_3 = arith.constant 0 : index
    %4 = vector.load %arg4[%c0_2, %c0_3] : memref<16x128xf32, #tpu.memory_space<vmem>>, vector<16x128xf32>
    %cst = arith.constant dense<0.000000e+00> : vector<128x128xf32>
    %5 = tpu.matmul %3, %4, %cst {dimension_numbers = #tpu.dot_dimension_numbers<[1], [0], [0], [1], [0, 0, 1, 1], [], []>} : vector<128x16xf32>, vector<16x128xf32>, vector<128x128xf32> -> vector<128x128xf32>
    %c0_4 = arith.constant 0 : index
    %c0_5 = arith.constant 0 : index
    %6 = vector.load %arg6[%c0_4, %c0_5] : memref<128x1xf32, #tpu.memory_space<vmem>>, vector<128x1xf32>
    %7 = vector.broadcast %6 : vector<128x1xf32> to vector<128x128xf32>
    %8 = arith.mulf %7, %5 : vector<128x128xf32>
    %c0_6 = arith.constant 0 : index
    %c0_7 = arith.constant 0 : index
    %9 = vector.load %arg2[%c0_6, %c0_7] : memref<128x128xbf16, #tpu.memory_space<vmem>>, vector<128x128xbf16>
    %10 = arith.extf %9 : vector<128x128xbf16> to vector<128x128xf32>
    %c0_8 = arith.constant 0 : index
    %c0_9 = arith.constant 0 : index
    %11 = vector.load %arg9[%c0_8, %c0_9] : memref<128x128xf32, #tpu.memory_space<vmem>>, vector<128x128xf32>
    %cst_10 = arith.constant dense<0.000000e+00> : vector<128x128xf32>
    %12 = tpu.matmul %10, %8, %cst_10 {dimension_numbers = #tpu.dot_dimension_numbers<[1], [0], [0], [1], [0, 0, 1, 1], [], []>} : vector<128x128xf32>, vector<128x128xf32>, vector<128x128xf32> -> vector<128x128xf32>
    %13 = arith.addf %11, %12 : vector<128x128xf32>
    %c0_11 = arith.constant 0 : index
    %c0_12 = arith.constant 0 : index
    %14 = vector.load %arg9[%c0_11, %c0_12] : memref<128x128xf32, #tpu.memory_space<vmem>>, vector<128x128xf32>
    tpu.vector_store %arg9[%c0_11, %c0_12], %13 {strides = array<i32>} : memref<128x128xf32, #tpu.memory_space<vmem>>, vector<128x128xf32>,
    %c0_i32_13 = arith.constant 0 : i32
    %15 = arith.cmpi eq, %arg1, %c0_i32_13 : i32
    %16 = arith.extui %15 : i1 to i32
    %c0_i32_14 = arith.constant 0 : i32
    %17 = arith.cmpi ne, %16, %c0_i32_14 : i32
    scf.if %17 {
      %c0_15 = arith.constant 0 : index
      %c0_16 = arith.constant 0 : index
      %18 = vector.load %arg5[%c0_15, %c0_16] : memref<128x1xf32, #tpu.memory_space<vmem>>, vector<128x1xf32>
      %c0_17 = arith.constant 0 : index
      %c0_18 = arith.constant 0 : index
      %19 = vector.load %arg9[%c0_17, %c0_18] : memref<128x128xf32, #tpu.memory_space<vmem>>, vector<128x128xf32>
      %20 = vector.broadcast %18 : vector<128x1xf32> to vector<128x128xf32>
      %21 = arith.mulf %20, %19 : vector<128x128xf32>
      %c0_19 = arith.constant 0 : index
      %c0_20 = arith.constant 0 : index
      %22 = vector.load %arg7[%c0_19, %c0_20] : memref<1x128xf32, #tpu.memory_space<vmem>>, vector<1x128xf32>
      %23 = vector.broadcast %22 : vector<1x128xf32> to vector<128x128xf32>
      %24 = arith.addf %21, %23 : vector<128x128xf32>
      %cst_21 = arith.constant 0.000000e+00 : f32
      %25 = vector.broadcast %cst_21 : f32 to vector<128x128xf32>
      %26 = arith.maximumf %24, %25 : vector<128x128xf32>
      %c0_22 = arith.constant 0 : index
      %c0_23 = arith.constant 0 : index
      %27 = vector.load %arg8[%c0_22, %c0_23] : memref<128x128xf32, #tpu.memory_space<vmem>>, vector<128x128xf32>
      tpu.vector_store %arg8[%c0_22, %c0_23], %26 {strides = array<i32>} : memref<128x128xf32, #tpu.memory_space<vmem>>, vector<128x128xf32>,
    } else {
    }
    return
  }
  func.func @transform_0(%arg0: i32, %arg1: i32) -> (i32, i32) {
    %c0_i32 = arith.constant 0 : i32
    return %arg0, %arg1 : i32, i32
  }
  func.func @transform_1(%arg0: i32, %arg1: i32) -> (i32, i32) {
    %c0_i32 = arith.constant 0 : i32
    %c0_i32_0 = arith.constant 0 : i32
    return %arg1, %c0_i32 : i32, i32
  }
  func.func @transform_2(%arg0: i32, %arg1: i32) -> (i32, i32) {
    %c0_i32 = arith.constant 0 : i32
    %c0_i32_0 = arith.constant 0 : i32
    %c0_i32_1 = arith.constant 0 : i32
    return %c0_i32, %c0_i32_0 : i32, i32
  }
  func.func @transform_3(%arg0: i32, %arg1: i32) -> (i32, i32) {
    %c0_i32 = arith.constant 0 : i32
    %c0_i32_0 = arith.constant 0 : i32
    return %arg0, %c0_i32 : i32, i32
  }
  func.func @transform_4(%arg0: i32, %arg1: i32) -> (i32, i32) {
    %c0_i32 = arith.constant 0 : i32
    %c0_i32_0 = arith.constant 0 : i32
    return %arg1, %c0_i32 : i32, i32
  }
  func.func @transform_5(%arg0: i32, %arg1: i32) -> (i32, i32) {
    %c0_i32 = arith.constant 0 : i32
    %c0_i32_0 = arith.constant 0 : i32
    %c0_i32_1 = arith.constant 0 : i32
    return %c0_i32, %c0_i32_0 : i32, i32
  }
  func.func @transform_6(%arg0: i32, %arg1: i32) -> (i32, i32) {
    %c0_i32 = arith.constant 0 : i32
    %c0_i32_0 = arith.constant 0 : i32
    return %arg0, %c0_i32 : i32, i32
  }
}

</mosaic_0001>

<bundles_post_ra>
// kernel: tpu_custom_call.1
= control target key start
LH: loop header
LB: loop body
LE: loop exit
PB: predicated region body
PF: predicated region fallthrough
CT: control target
= control target key end

     0   :  { %vm62_vm0 = vcmask 130048   ;;  %v1067_v4 = vmov 0   ;;  %s1337_s0 = inlined_call_operand.vmem [shape: bf16[128,128], index: 0, kind: input, shape index: {}]   ;;  %s1338_s1 = inlined_call_operand.vmem [shape: f32[128,16], index: 1, kind: input, shape index: {}]   ;;  %s1339_s2 = inlined_call_operand.vmem [shape: f32[16,128], index: 2, kind: input, shape index: {}]   ;;  %s1340_s3 = inlined_call_operand.vmem [shape: f32[128,1], index: 3, kind: input, shape index: {}]   ;;  %s1341_s4 = inlined_call_operand.vmem [shape: f32[128,1], index: 4, kind: input, shape index: {}]   ;;  %s1342_s5 = inlined_call_operand.vmem [shape: f32[1,128], index: 5, kind: input, shape index: {}]   ;;  %s1343_s6 = inlined_call_operand.hbm [shape: f32[128,128], index: 6, kind: output, shape index: {}]  }
   0x1   :  { %v60_v0 = vld [vmem:[%s1339_s2] sm:$0xff]  ;;  %v61_v1 = vld [vmem:[%s1339_s2 + $0x8] sm:$0xff]  ;;  %1041 = vset.pattern.permute.xlu0 %v1067_v4  ;;  %1042 = vset.pattern.permute.xlu1 %v1067_v4  ;;  %v46_v7 = vld [vmem:[%s1338_s1 + $0x10] sm:$0xff] }
   0x2   :  { %v44_v2 = vld [vmem:[%s1338_s1] sm:$0xff]  ;;  %v985_v3 = vpack.c.bf16 %v61_v1, %v60_v0  ;;  %v45_v5 = vld [vmem:[%s1338_s1 + $0x8] sm:$0xff]  ;;  %v258_v8 = vld [vmem:[%s1341_s4 + $0x10] sm:$0xff] }
   0x3   :  { %905 = vmatprep.mubr.msk.f32.mxu0 %vm62_vm0, %v44_v2  ;;  %v256_v6 = vld [vmem:[%s1341_s4] sm:$0xff]  ;;  %284 = vperm.xlu1 %1042, %v258_v8   ;;  %v257_v9 = vld [vmem:[%s1341_s4 + $0x8] sm:$0xff]  ;;  %v259_v10 = vld [vmem:[%s1341_s4 + $0x18] sm:$0xff] }
   0x4   :  { %986 = vmatprep.subr.bf16.mxu0 %v985_v3  ;;  %274 = vperm.xlu0 %1041, %v256_v6   ;;  %v47_v11 = vld [vmem:[%s1338_s1 + $0x18] sm:$0xff]  ;;  %v48_v12 = vld [vmem:[%s1338_s1 + $0x20] sm:$0xff]  ;;  %v261_v14 = vld [vmem:[%s1341_s4 + $0x28] sm:$0xff] }
   0x5   :  { %988 = vmatpush3.bf16.msra.mxu0 %v985_v3  ;;  %v260_v13 = vld [vmem:[%s1341_s4 + $0x20] sm:$0xff]  ;;  %v49_v15 = vld [vmem:[%s1338_s1 + $0x28] sm:$0xff]  ;;  %v50_v16 = vld [vmem:[%s1338_s1 + $0x30] sm:$0xff] }
   0x6   :  { %v262_v17 = vld [vmem:[%s1341_s4 + $0x30] sm:$0xff]  ;;  %v263_v18 = vld [vmem:[%s1341_s4 + $0x38] sm:$0xff] }
   0x7   :  { %289 = vperm.xlu1 %1042, %v259_v10   ;;  %v51_v19 = vld [vmem:[%s1338_s1 + $0x38] sm:$0xff] }
   0x8   :  { %906 = vmatmul.mubr.msk.f32.vlgmr.msra.gmra.mrb[0].mxu0 %vm62_vm0, %v45_v5  ;;  %279 = vperm.xlu0 %1041, %v257_v9  }
   0x9   :  { %908 = vmatprep.mubr.msk.f32.mxu0 %vm62_vm0, %v46_v7 }
   0xb   :  { %299 = vperm.xlu1 %1042, %v261_v14  }
   0xc   :  { %909 = vmatmul.mubr.msk.f32.gmra.mrb[2].mxu0 %vm62_vm0, %v47_v11  ;;  %294 = vperm.xlu0 %1041, %v260_v13  }
   0xd   :  { %911 = vmatprep.mubr.msk.f32.mxu0 %vm62_vm0, %v48_v12 }
  0x10   :  { %912 = vmatmul.mubr.msk.f32.gmra.mrb[4].mxu0 %vm62_vm0, %v49_v15 }
  0x11   :  { %914 = vmatprep.mubr.msk.f32.mxu0 %vm62_vm0, %v50_v16 }
  0x12   :  { %11 = vsyncpa [#allocation4], 0  ;;  %v52_v20 = vld [vmem:[%s1338_s1 + $0x40] sm:$0xff]  ;;  %304 = vperm.xlu0 %1041, %v262_v17   ;;  %309 = vperm.xlu1 %1042, %v263_v18   ;;  %v265_v22 = vld [vmem:[%s1341_s4 + $0x48] sm:$0xff] }
  0x13   :  { %v264_v21 = vld [vmem:[%s1341_s4 + $0x40] sm:$0xff]  ;;  %v53_v23 = vld [vmem:[%s1338_s1 + $0x48] sm:$0xff]  ;;  %v54_v24 = vld [vmem:[%s1338_s1 + $0x50] sm:$0xff] }
  0x14   :  { %915 = vmatmul.mubr.msk.f32.gmra.mrb[6].mxu0 %vm62_vm0, %v51_v19  ;;  %v266_v25 = vld [vmem:[%s1341_s4 + $0x50] sm:$0xff]  ;;  %v267_v26 = vld [vmem:[%s1341_s4 + $0x58] sm:$0xff]  ;;  %v56_v28 = vld [vmem:[%s1338_s1 + $0x60] sm:$0xff] }
  0x15   :  { %917 = vmatprep.mubr.msk.f32.mxu0 %vm62_vm0, %v52_v20  ;;  %v55_v27 = vld [vmem:[%s1338_s1 + $0x58] sm:$0xff]  ;;  %v268_v29 = vld [vmem:[%s1341_s4 + $0x60] sm:$0xff]  ;;  %v269_v30 = vld [vmem:[%s1341_s4 + $0x68] sm:$0xff] }
  0x16   :  { %314 = vperm.xlu0 %1041, %v264_v21   ;;  %319 = vperm.xlu1 %1042, %v265_v22   ;;  %v57_v31 = vld [vmem:[%s1338_s1 + $0x68] sm:$0xff]  ;;  %v58_v32 = vld [vmem:[%s1338_s1 + $0x70] sm:$0xff]  ;;  %v271_v34 = vld [vmem:[%s1341_s4 + $0x78] sm:$0xff] }
  0x17   :  { %v270_v33 = vld [vmem:[%s1341_s4 + $0x70] sm:$0xff]  ;;  %v59_v35 = vld [vmem:[%s1338_s1 + $0x78] sm:$0xff]  ;;  %v596_v36 = vld [vmem:[%s1340_s3] sm:$0xff] }
  0x18   :  { %918 = vmatmul.mubr.msk.f32.gmra.mrb[8].mxu0 %vm62_vm0, %v53_v23  ;;  %v597_v37 = vld [vmem:[%s1340_s3 + $0x8] sm:$0xff]  ;;  %v598_v38 = vld [vmem:[%s1340_s3 + $0x10] sm:$0xff]  ;;  %v599_v39 = vld [vmem:[%s1340_s3 + $0x18] sm:$0xff] }
  0x19   :  { %920 = vmatprep.mubr.msk.f32.mxu0 %vm62_vm0, %v54_v24  ;;  %v600_v40 = vld [vmem:[%s1340_s3 + $0x20] sm:$0xff]  ;;  %v601_v41 = vld [vmem:[%s1340_s3 + $0x28] sm:$0xff]  ;;  %v602_v42 = vld [vmem:[%s1340_s3 + $0x30] sm:$0xff] }
  0x1a   :  { %324 = vperm.xlu0 %1041, %v266_v25   ;;  %329 = vperm.xlu1 %1042, %v267_v26   ;;  %v603_v43 = vld [vmem:[%s1340_s3 + $0x38] sm:$0xff]  ;;  %v604_v44 = vld [vmem:[%s1340_s3 + $0x40] sm:$0xff]  ;;  %v605_v45 = vld [vmem:[%s1340_s3 + $0x48] sm:$0xff] }
  0x1b   :  { %v606_v46 = vld [vmem:[%s1340_s3 + $0x50] sm:$0xff]  ;;  %v607_v47 = vld [vmem:[%s1340_s3 + $0x58] sm:$0xff]  ;;  %v608_v48 = vld [vmem:[%s1340_s3 + $0x60] sm:$0xff] }
  0x1c   :  { %921 = vmatmul.mubr.msk.f32.gmra.mrb[10].mxu0 %vm62_vm0, %v55_v27  ;;  %v609_v49 = vld [vmem:[%s1340_s3 + $0x68] sm:$0xff]  ;;  %v610_v50 = vld [vmem:[%s1340_s3 + $0x70] sm:$0xff]  ;;  %v611_v51 = vld [vmem:[%s1340_s3 + $0x78] sm:$0xff] }
  0x1d   :  { %923 = vmatprep.mubr.msk.f32.mxu0 %vm62_vm0, %v56_v28  ;;  %v1275_v52 = vld [vmem:[%s1337_s0] sm:$0xff]   ;;  %v1280_v53 = vld [vmem:[%s1337_s0 + $0x18] sm:$0xff]  }
  0x1e   :  { %334 = vperm.xlu0 %1041, %v268_v29   ;;  %339 = vperm.xlu1 %1042, %v269_v30   ;;  %v814_v54 = vunpack.c.l.bf16 %v1275_v52  ;;  %v826_v55 = vunpack.c.l.bf16 %v1280_v53 }
  0x20   :  { %924 = vmatmul.mubr.msk.f32.gmra.mrb[12].mxu0 %vm62_vm0, %v57_v31  ;;  %970 = vmatprep.mubr.f32.mxu1 %v826_v55 }
  0x21   :  { %926 = vmatprep.mubr.msk.f32.mxu0 %vm62_vm0, %v58_v32 }
  0x22   :  { %344 = vperm.xlu0 %1041, %v270_v33   ;;  %349 = vperm.xlu1 %1042, %v271_v34  }
  0x24   :  { %927 = vmatmul.mubr.msk.f32.gmra.mrb[14].mxu0 %vm62_vm0, %v59_v35 }
  0x25   :  { %961 = vmatprep.mubr.f32.mxu0 %v814_v54 }
  0x26   :  { %630 = vperm.xlu0 %1041, %v596_v36   ;;  %635 = vperm.xlu1 %1042, %v597_v37  }
  0x2a   :  { %640 = vperm.xlu0 %1041, %v598_v38   ;;  %645 = vperm.xlu1 %1042, %v599_v39  }
  0x2e   :  { %650 = vperm.xlu0 %1041, %v600_v40   ;;  %655 = vperm.xlu1 %1042, %v601_v41  }
  0x32   :  { %660 = vperm.xlu0 %1041, %v602_v42   ;;  %665 = vperm.xlu1 %1042, %v603_v43  }
  0x36   :  { %670 = vperm.xlu0 %1041, %v604_v44   ;;  %675 = vperm.xlu1 %1042, %v605_v45  }
  0x3a   :  { %680 = vperm.xlu0 %1041, %v606_v46   ;;  %685 = vperm.xlu1 %1042, %v607_v47  }
  0x3e   :  { %690 = vperm.xlu0 %1041, %v608_v48   ;;  %695 = vperm.xlu1 %1042, %v609_v49   ;;  %v844_v48 = vld [vmem:[%s1337_s0 + $0x8] sm:$0xff]   ;;  %v847_v49 = vld [vmem:[%s1337_s0 + $0x20] sm:$0xff]  }
  0x3f   :  { %v818_v54 = vunpack.c.l.bf16 %v844_v48  ;;  %v830_v55 = vunpack.c.l.bf16 %v847_v49 }
  0x42   :  { %700 = vperm.xlu0 %1041, %v610_v50   ;;  %705 = vperm.xlu1 %1042, %v611_v51   ;;  %v815_v50 = vunpack.c.h.bf16 %v1275_v52  ;;  %v827_v51 = vunpack.c.h.bf16 %v1280_v53 }
  0x82   :  { %v285_v56 = vpop.permute.xlu1 %284 }
  0x83   :  { %v275_v57 = vpop.permute.xlu0 %274 }
  0x86   :  { %v290_v58 = vpop.permute.xlu1 %289 }
  0x87   :  { %v280_v59 = vpop.permute.xlu0 %279 }
  0x8a   :  { %v300_v60 = vpop.permute.xlu1 %299 }
  0x8b   :  { %v295_v61 = vpop.permute.xlu0 %294 }
  0x91   :  { %v310_v2 = vpop.permute.xlu1 %309  ;;  %v305_v5 = vpop.permute.xlu0 %304 }
  0x95   :  { %v320_v13 = vpop.permute.xlu1 %319  ;;  %v315_v15 = vpop.permute.xlu0 %314 }
  0x99   :  { %v330_v21 = vpop.permute.xlu1 %329  ;;  %v325_v24 = vpop.permute.xlu0 %324 }
  0x9d   :  { %v340_v32 = vpop.permute.xlu1 %339  ;;  %v335_v34 = vpop.permute.xlu0 %334 }
  0xa1   :  { %v350_v40 = vpop.permute.xlu1 %349  ;;  %v345_v43 = vpop.permute.xlu0 %344 }
  0xdb   :  { %v907_v62 = vpop.f32.mrb[0].mxu0 }
  0xdc   :  { %v353_v63 = vmul.f32 %v907_v62, %v280_v59  ;;  %v177_v0 = vpop.f32.mrb[1].mxu0  ;;  %v831_v59 = vunpack.c.h.bf16 %v847_v49 }
  0xdd   :  { %v352_v1 = vmul.f32 %v275_v57, %v177_v0  ;;  %v848_v57 = vld [vmem:[%s1337_s0 + $0x28] sm:$0xff]   ;;  %v850_v0 = vld [vmem:[%s1337_s0 + $0x38] sm:$0xff]  }
  0xde   :  { %v834_v53 = vunpack.c.l.bf16 %v848_v57  ;;  %v835_v62 = vunpack.c.h.bf16 %v848_v57 }
  0xdf   :  { %v989_v3 = vpack.c.bf16 %v353_v63, %v352_v1  ;;  %v910_v4 = vpop.f32.mrb[2].mxu0 }
  0xe0   :  { %v355_v6 = vmul.f32 %v910_v4, %v290_v58  ;;  %v187_v7 = vpop.f32.mrb[3].mxu0  ;;  %v819_v58 = vunpack.c.h.bf16 %v844_v48  ;;  %v631_v4 = vpop.permute.xlu0 %630 }
  0xe1   :  { %v354_v8 = vmul.f32 %v285_v56, %v187_v7  ;;  %990 = vmatprep.subr.bf16.mxu0 %v989_v3  ;;  %1021 = vmatprep.subr.bf16.mxu1 %v989_v3  ;;  %v845_v56 = vld [vmem:[%s1337_s0 + $0x10] sm:$0xff]  }
  0xe2   :  { %992 = vmatpush3.bf16.msra.mxu0 %v989_v3  ;;  %1029 = vmatpush3.bf16.msra.mxu1 %v989_v3  ;;  %v822_v52 = vunpack.c.l.bf16 %v845_v56  ;;  %v843_v3 = vunpack.c.h.bf16 %v850_v0 }
  0xe3   :  { %v993_v9 = vpack.c.bf16 %v355_v6, %v354_v8  ;;  %v913_v10 = vpop.f32.mrb[4].mxu0 }
  0xe4   :  { %v357_v11 = vmul.f32 %v913_v10, %v300_v60  ;;  %v197_v12 = vpop.f32.mrb[5].mxu0  ;;  %v849_v60 = vld [vmem:[%s1337_s0 + $0x30] sm:$0xff]   ;;  %v641_v6 = vpop.permute.xlu0 %640 }
  0xe5   :  { %v356_v14 = vmul.f32 %v295_v61, %v197_v12  ;;  %994 = vmatprep.subr.bf16.mxu0 %v993_v9  ;;  %1022 = vmatprep.subr.bf16.mxu1 %v993_v9  ;;  %v823_v61 = vunpack.c.h.bf16 %v845_v56  ;;  %v838_v63 = vunpack.c.l.bf16 %v849_v60  ;;  %v839_v1 = vunpack.c.h.bf16 %v849_v60 }
  0xe6   :  { %996 = vmatpush3.bf16.msra.mxu0 %v993_v9  ;;  %1030 = vmatpush3.bf16.msra.mxu1 %v993_v9 }
  0xe7   :  { %v997_v16 = vpack.c.bf16 %v357_v11, %v356_v14  ;;  %v916_v17 = vpop.f32.mrb[6].mxu0 }
  0xe8   :  { %v359_v18 = vmul.f32 %v916_v17, %v310_v2  ;;  %v207_v19 = vpop.f32.mrb[7].mxu0  ;;  %v842_v2 = vunpack.c.l.bf16 %v850_v0  ;;  %v651_v8 = vpop.permute.xlu0 %650 }
  0xe9   :  { %v358_v20 = vmul.f32 %v305_v5, %v207_v19  ;;  %998 = vmatprep.subr.bf16.mxu0 %v997_v16  ;;  %1023 = vmatprep.subr.bf16.mxu1 %v997_v16  ;;  %v636_v5 = vpop.permute.xlu1 %635 }
  0xea   :  { %1000 = vmatpush3.bf16.msra.mxu0 %v997_v16  ;;  %1031 = vmatpush3.bf16.msra.mxu1 %v997_v16 }
  0xeb   :  { %v1001_v22 = vpack.c.bf16 %v359_v18, %v358_v20  ;;  %v919_v23 = vpop.f32.mrb[8].mxu0 }
  0xec   :  { %v361_v25 = vmul.f32 %v919_v23, %v320_v13  ;;  %v217_v26 = vpop.f32.mrb[9].mxu0  ;;  %v661_v10 = vpop.permute.xlu0 %660 }
  0xed   :  { %v360_v27 = vmul.f32 %v315_v15, %v217_v26  ;;  %1002 = vmatprep.subr.bf16.mxu0 %v1001_v22  ;;  %1024 = vmatprep.subr.bf16.mxu1 %v1001_v22  ;;  %v646_v7 = vpop.permute.xlu1 %645  ;;  %v1307_v15 = vld [vmem:[%s1342_s5] ss:$0 sm:$0xff]  ;;  %s1068_s5 = smov [#allocation3]  }
  0xee   :  { %1004 = vmatpush3.bf16.msra.mxu0 %v1001_v22  ;;  %1032 = vmatpush3.bf16.msra.mxu1 %v1001_v22  ;;  %s784_s8 = sshll.u32 %s1068_s5, 4  ;;  %s785_s8 = int_to_ptr.vmem [resolvable:$true] %s784_s8 }
  0xef   :  { %v1005_v28 = vpack.c.bf16 %v361_v25, %v360_v27  ;;  %v922_v29 = vpop.f32.mrb[10].mxu0  ;;  %s1043_s9 = scalar_lea.vmem %s785_s8, 2048  ;;  %p1048_p1 = scmp.lt.s32.totalorder %s785_s8, %s785_s8 }
  0xf0   :  { %v363_v30 = vmul.f32 %v922_v29, %v330_v21  ;;  %v227_v31 = vpop.f32.mrb[11].mxu0  ;;  %v671_v12 = vpop.permute.xlu0 %670  ;;  %p1044_p0 = scmp.ne.s32.totalorder %s785_s8, %s1043_s9  ;;  %p1049_p2 = scmp.lt.s32.totalorder %s1043_s9, %s1043_s9 }
  0xf1   :  { %v362_v33 = vmul.f32 %v325_v24, %v227_v31  ;;  %1006 = vmatprep.subr.bf16.mxu0 %v1005_v28  ;;  %1025 = vmatprep.subr.bf16.mxu1 %v1005_v28  ;;  %v656_v9 = vpop.permute.xlu1 %655 }
  0xf2   :  { %1008 = vmatpush3.bf16.msra.mxu0 %v1005_v28  ;;  %1033 = vmatpush3.bf16.msra.mxu1 %v1005_v28  ;;  %p1050_p3 = por %p1049_p2, %p1048_p1 }
  0xf3   :  { %v1009_v35 = vpack.c.bf16 %v363_v30, %v362_v33  ;;  %v925_v36 = vpop.f32.mrb[12].mxu0 }
  0xf4   :  { %v365_v37 = vmul.f32 %v925_v36, %v340_v32  ;;  %v237_v38 = vpop.f32.mrb[13].mxu0  ;;  %v681_v23 = vpop.permute.xlu0 %680  ;;  %p1051_p4 = pnand %p1050_p3, %p1044_p0 }
  0xf5   :  { %v364_v39 = vmul.f32 %v335_v34, %v237_v38  ;;  %1010 = vmatprep.subr.bf16.mxu0 %v1009_v35  ;;  %1026 = vmatprep.subr.bf16.mxu1 %v1009_v35  ;;  %v666_v11 = vpop.permute.xlu1 %665 }
  0xf6   :  { %1012 = vmatpush3.bf16.msra.mxu0 %v1009_v35  ;;  %1034 = vmatpush3.bf16.msra.mxu1 %v1009_v35 }
  0xf7   :  { %v1013_v41 = vpack.c.bf16 %v365_v37, %v364_v39  ;;  %v928_v42 = vpop.f32.mrb[14].mxu0 }
  0xf8   :  { %v367_v44 = vmul.f32 %v928_v42, %v350_v40  ;;  %v247_v45 = vpop.f32.mrb[15].mxu0 }
  0xf9   :  { %v366_v46 = vmul.f32 %v345_v43, %v247_v45  ;;  %1014 = vmatprep.subr.bf16.mxu0 %v1013_v41  ;;  %1027 = vmatprep.subr.bf16.mxu1 %v1013_v41  ;;  %v676_v13 = vpop.permute.xlu1 %675 }
  0xfa   :  { %1016 = vmatpush3.bf16.msra.mxu0 %v1013_v41  ;;  %1035 = vmatpush3.bf16.msra.mxu1 %v1013_v41 }
  0xfb   :  { %v1017_v47 = vpack.c.bf16 %v367_v44, %v366_v46 }
  0xfd   :  { %1018 = vmatprep.subr.bf16.mxu0 %v1017_v47  ;;  %1028 = vmatprep.subr.bf16.mxu1 %v1017_v47  ;;  %v686_v24 = vpop.permute.xlu1 %685 }
  0xfe   :  { %1020 = vmatpush3.bf16.msra.mxu0 %v1017_v47  ;;  %1036 = vmatpush3.bf16.msra.mxu1 %v1017_v47 }
 0x101   :  { %962 = vmatmul.mubr.f32.vlgmr.msra.gmra.mrb[16].mxu0 %v815_v50  ;;  %971 = vmatmul.mubr.f32.vlgmr.msra.gmra.mrb[0].mxu1 %v827_v51 }
 0x102   :  { %964 = vmatprep.mubr.f32.mxu0 %v818_v54  ;;  %973 = vmatprep.mubr.f32.mxu1 %v830_v55  ;;  %v696_v55 = vpop.permute.xlu1 %695 }
 0x105   :  { %965 = vmatmul.mubr.f32.gmra.mrb[18].mxu0 %v819_v58  ;;  %974 = vmatmul.mubr.f32.gmra.mrb[2].mxu1 %v831_v59 }
 0x106   :  { %967 = vmatprep.mubr.f32.mxu0 %v822_v52  ;;  %976 = vmatprep.mubr.f32.mxu1 %v834_v53  ;;  %v691_v52 = vpop.permute.xlu0 %690 }
 0x109   :  { %968 = vmatmul.mubr.f32.gmra.mrb[20].mxu0 %v823_v61  ;;  %977 = vmatmul.mubr.f32.gmra.mrb[4].mxu1 %v835_v62 }
 0x10a   :  { %979 = vmatprep.mubr.f32.mxu1 %v838_v63 }
 0x10d   :  { %980 = vmatmul.mubr.f32.gmra.mrb[6].mxu1 %v839_v1 }
 0x10e   :  { %982 = vmatprep.mubr.f32.mxu1 %v842_v2 }
 0x111   :  { %983 = vmatmul.mubr.f32.gmra.mrb[8].mxu1 %v843_v3 }
 0x1d4   :  { %v963_v14 = vpop.f32.mrb[16].mxu0  ;;  %v972_v16 = vpop.f32.mrb[0].mxu1 }
 0x1d5   :  { %v709_v17 = vmul.f32 %v963_v14, %v636_v5  ;;  %v715_v18 = vmul.f32 %v972_v16, %v666_v11  ;;  %v482_v19 = vpop.f32.mrb[17].mxu0  ;;  %v512_v20 = vpop.f32.mrb[1].mxu1 }
 0x1d6   :  { %v708_v21 = vmul.f32 %v631_v4, %v482_v19  ;;  %v714_v22 = vmul.f32 %v661_v10, %v512_v20  ;;  %v701_v11 = vpop.permute.xlu0 %700 }
 0x1d7   :  { %v732_v25 = vadd.f32 %v1307_v15, %v709_v17  ;;  %v738_v26 = vadd.f32 %v1307_v15, %v715_v18 }
 0x1d8   :  { %v731_v27 = vadd.f32 %v1307_v15, %v708_v21  ;;  %v737_v28 = vadd.f32 %v1307_v15, %v714_v22  ;;  %v966_v29 = vpop.f32.mrb[18].mxu0  ;;  %v975_v30 = vpop.f32.mrb[2].mxu1 }
 0x1d9   :  { %v748_v31 = vmax.f32 %v732_v25, 0.0  ;;  %v754_v32 = vmax.f32 %v738_v26, 0.0  ;;  %v711_v33 = vmul.f32 %v966_v29, %v646_v7  ;;  %v717_v34 = vmul.f32 %v975_v30, %v676_v13  ;;  %v492_v35 = vpop.f32.mrb[19].mxu0  ;;  %v522_v36 = vpop.f32.mrb[3].mxu1 }
 0x1da   :  { %v747_v37 = vmax.f32 %v731_v27, 0.0  ;;  %v753_v38 = vmax.f32 %v737_v28, 0.0  ;;  %v710_v39 = vmul.f32 %v641_v6, %v492_v35  ;;  %v716_v40 = vmul.f32 %v671_v12, %v522_v36 }
 0x1db   :  { %764 = vst [vmem:[#allocation3 + $0x8] sm:$0xff] %v748_v31  ;;  %770 = vst [vmem:[#allocation3 + $0x38] sm:$0xff] %v754_v32  ;;  %v734_v41 = vadd.f32 %v1307_v15, %v711_v33  ;;  %v740_v42 = vadd.f32 %v1307_v15, %v717_v34 }
 0x1dc   :  { %763 = vst [vmem:[#allocation3] sm:$0xff] %v747_v37  ;;  %769 = vst [vmem:[#allocation3 + $0x30] sm:$0xff] %v753_v38  ;;  %v733_v43 = vadd.f32 %v1307_v15, %v710_v39  ;;  %v739_v44 = vadd.f32 %v1307_v15, %v716_v40  ;;  %v969_v45 = vpop.f32.mrb[20].mxu0  ;;  %v978_v46 = vpop.f32.mrb[4].mxu1 }
 0x1dd   :  { %v750_v47 = vmax.f32 %v734_v41, 0.0  ;;  %v756_v48 = vmax.f32 %v740_v42, 0.0  ;;  %v713_v49 = vmul.f32 %v969_v45, %v656_v9  ;;  %v719_v50 = vmul.f32 %v978_v46, %v686_v24  ;;  %v502_v51 = vpop.f32.mrb[21].mxu0  ;;  %v532_v54 = vpop.f32.mrb[5].mxu1 }
 0x1de   :  { %v749_v56 = vmax.f32 %v733_v43, 0.0  ;;  %v755_v57 = vmax.f32 %v739_v44, 0.0  ;;  %v712_v58 = vmul.f32 %v651_v8, %v502_v51  ;;  %v718_v59 = vmul.f32 %v681_v23, %v532_v54  ;;  %v706_v8 = vpop.permute.xlu1 %705 }
 0x1df   :  { %766 = vst [vmem:[#allocation3 + $0x18] sm:$0xff] %v750_v47  ;;  %772 = vst [vmem:[#allocation3 + $0x48] sm:$0xff] %v756_v48  ;;  %v736_v53 = vadd.f32 %v1307_v15, %v713_v49  ;;  %v742_v60 = vadd.f32 %v1307_v15, %v719_v50 }
 0x1e0   :  { %765 = vst [vmem:[#allocation3 + $0x10] sm:$0xff] %v749_v56  ;;  %771 = vst [vmem:[#allocation3 + $0x40] sm:$0xff] %v755_v57  ;;  %v735_v61 = vadd.f32 %v1307_v15, %v712_v58  ;;  %v741_v62 = vadd.f32 %v1307_v15, %v718_v59  ;;  %v981_v63 = vpop.f32.mrb[6].mxu1 }
 0x1e1   :  { %v752_v0 = vmax.f32 %v736_v53, 0.0  ;;  %v758_v1 = vmax.f32 %v742_v60, 0.0  ;;  %v721_v2 = vmul.f32 %v981_v63, %v696_v55  ;;  %v542_v3 = vpop.f32.mrb[7].mxu1 }
 0x1e2   :  { %v751_v4 = vmax.f32 %v735_v61, 0.0  ;;  %v757_v5 = vmax.f32 %v741_v62, 0.0  ;;  %v720_v6 = vmul.f32 %v691_v52, %v542_v3 }
 0x1e3   :  { %768 = vst [vmem:[#allocation3 + $0x28] sm:$0xff] %v752_v0  ;;  %774 = vst [vmem:[#allocation3 + $0x58] sm:$0xff] %v758_v1  ;;  %v744_v7 = vadd.f32 %v1307_v15, %v721_v2 }
 0x1e4   :  { %767 = vst [vmem:[#allocation3 + $0x20] sm:$0xff] %v751_v4  ;;  %773 = vst [vmem:[#allocation3 + $0x50] sm:$0xff] %v757_v5  ;;  %v743_v9 = vadd.f32 %v1307_v15, %v720_v6  ;;  %v984_v10 = vpop.f32.mrb[8].mxu1 }
 0x1e5   :  { %v760_v12 = vmax.f32 %v744_v7, 0.0  ;;  %v723_v13 = vmul.f32 %v984_v10, %v706_v8  ;;  %v552_v14 = vpop.f32.mrb[9].mxu1 }
 0x1e6   :  { %v759_v16 = vmax.f32 %v743_v9, 0.0  ;;  %v722_v17 = vmul.f32 %v701_v11, %v552_v14 }
 0x1e7   :  { %776 = vst [vmem:[#allocation3 + $0x68] sm:$0xff] %v760_v12  ;;  %v746_v18 = vadd.f32 %v1307_v15, %v723_v13 }
 0x1e8   :  { %775 = vst [vmem:[#allocation3 + $0x60] sm:$0xff] %v759_v16  ;;  %v745_v19 = vadd.f32 %v1307_v15, %v722_v17 }
 0x1e9   :  { %v762_v20 = vmax.f32 %v746_v18, 0.0 }
 0x1ea   :  { %v761_v21 = vmax.f32 %v745_v19, 0.0 }
 0x1eb   :  { %778 = vst [vmem:[#allocation3 + $0x78] sm:$0xff] %v762_v20 }
 0x1ec   :  { %777 = vst [vmem:[#allocation3 + $0x70] sm:$0xff] %v761_v21 }
 0x1ed   :  { %1054 = shalt.err (!%p1051_p4)
}
 0x1ee   :  { %s1055_s12 = scalar_lea.hbm %s1343_s6, 2048 }
 0x1ef   :  { %p1056_p5 = scmp.ne.s32.totalorder %s1343_s6, %s1055_s12  ;;  %p1059_p6 = scmp.lt.u32.totalorder %s1055_s12, %s1343_s6 }
 0x1f1   :  { %p1061_p7 = pnand %p1059_p6, %p1056_p5 }
 0x1f3   :  { %1064 = shalt.err (!%p1061_p7)
}
 0x1f4   :  { %s1069_s17 = smov 128   ;;  %s1070_s4 = smov 8  }
 0x1f5   :  { %790 = dma.vmem_to_hbm [thread:$0]  %s785_s8, 2048, %s1343_s6, [#allocation4], %s1069_s17, %s1069_s17, %s1070_s4  }
 0x1f6   :  { %1065 = dma.done.wait [#allocation4], 2048  }
 0x1f7   :  { %1066 = vsyncadd [#allocation4], 4294965248 }
 0x1f8   :  { %794 = vsyncpa [#allocation4], 1 }

</bundles_post_ra>
